<compile_context>
chip_gen: v7x
topology: tpu7x:2x2x1
jax: 0.10.0
libtpu: 0.0.40
codegen_flags: <defaults>
</compile_context>

<pallas_src>
import functools
from typing import NamedTuple

import jax
import jax.numpy as jnp
from jax.experimental import pallas as pl
from jax.experimental.pallas import tpu as pltpu


def _round_up(x: int, m: int) -> int:
    return (x + m - 1) // m * m


class TilePlan(NamedTuple):
    tm: int
    tn: int
    tk: int
    bp: int      # padded batch (rows)
    kp: int      # padded input dim
    np_: int     # padded output dim
    b: int
    d_in: int
    d_out: int


def plan_tiles(batch: int, d_in: int, d_out: int, *,
               tm: int = 512, tn: int = 512, tk: int = 1024) -> TilePlan:
    """Pick hardware-aligned tile sizes + padded problem dims (static)."""
    # bf16 native packing: second-minor multiple of 16, lanes multiple of 128.
    tm = min(tm, _round_up(batch, 16))
    tk = min(tk, _round_up(d_in, 128))
    tn = min(tn, _round_up(d_out, 128))

    bp = _round_up(batch, tm)

    # v7x megacore: with a single M tile, guarantee >=2 "parallel" N tiles so
    # both TensorCores get work (only possible when D_out needs >=256 lanes).
    if bp // tm == 1:
        n_aligned = _round_up(d_out, 128)
        if n_aligned >= 256:
            tn = min(tn, max(128, (n_aligned // 2) // 128 * 128))

    kp = _round_up(d_in, tk)
    np_pad = _round_up(d_out, tn)
    return TilePlan(tm, tn, tk, bp, kp, np_pad, batch, d_in, d_out)


def prepare_weight(weight, plan: TilePlan):
    """One-time weight preprocessing (hoisted out of the hot path).

    weight: (D_out, D_in) — PyTorch nn.Linear layout (no bias).
    Returns a (Kp, Np) bf16 array: transposed, zero-padded, ready for a plain
    NN matmul on the MXU.  Cache the result and reuse it across forwards.
    """
    d_out, d_in = weight.shape
    assert (d_in, d_out) == (plan.d_in, plan.d_out), "weight/plan shape mismatch"
    wt = weight.T.astype(jnp.bfloat16)               # (D_in, D_out)
    if (plan.kp, plan.np_) != (d_in, d_out):
        wt = jnp.pad(wt, ((0, plan.kp - d_in), (0, plan.np_ - d_out)))
    return wt


def _linear_relu_kernel(x_ref, w_ref, o_ref, acc_ref):
    """x_ref: (tm, tk) bf16; w_ref: (tk, tn) bf16 (pre-transposed); o_ref: (tm, tn)."""
    @pl.when(pl.program_id(2) == 0)
    def _():
        acc_ref[...] = jnp.zeros_like(acc_ref)

    # Plain NN matmul — weight was transposed once in prepare_weight, so no
    # NT contraction / per-K-step weight-tile transpose here.
    acc_ref[...] += jnp.dot(x_ref[...], w_ref[...],
                            preferred_element_type=jnp.float32)

    @pl.when(pl.program_id(2) == pl.num_programs(2) - 1)
    def _():
        o_ref[...] = jnp.maximum(acc_ref[...], 0.0).astype(o_ref.dtype)


@functools.partial(jax.jit, static_argnames=("plan", "out_dtype"))
def linear_block_prepared(x, w_prepared, *, plan: TilePlan, out_dtype=None):
    """Hot-path forward: x (B, D_in); w_prepared from prepare_weight(plan)."""
    tm, tn, tk, bp, kp, np_pad, b, d_in, d_out = plan
    assert x.shape == (b, d_in)
    assert w_prepared.shape == (kp, np_pad)
    assert w_prepared.dtype == jnp.bfloat16
    if out_dtype is None:
        out_dtype = x.dtype

    # Per-call activation prep only (x changes every call; W does not).
    xp = x.astype(jnp.bfloat16)
    if (bp, kp) != (b, d_in):
        xp = jnp.pad(xp, ((0, bp - b), (0, kp - d_in)))

    grid = (bp // tm, np_pad // tn, kp // tk)
    grid_k = grid[2]

    # Small-batch regime is pure weight streaming (arithmetic intensity ~ B
    # flops/byte): deepen W buffering so DMA issue latency never shows between
    # K steps.  Only meaningful when there are >=2 K steps.
    deep_w = (bp <= 64) and (grid_k >= 2)
    w_spec_kwargs = dict(pipeline_mode=pl.Buffered(3)) if deep_w else {}
    w_spec = pl.BlockSpec((tk, tn), lambda i, j, k: (k, j), **w_spec_kwargs)

    out_itemsize = jnp.dtype(out_dtype).itemsize
    w_bufs = 3 if deep_w else 2
    vmem_est = (2 * tm * tk * 2            # x double buffer (bf16)
                + w_bufs * tk * tn * 2     # W buffers (bf16)
                + 2 * tm * tn * out_itemsize  # out double buffer
                + tm * tn * 4)             # f32 accumulator scratch
    # Cover v5e's 16-MiB scoped default, stay within v7x's 64-MiB physical VMEM.
    vmem_limit = int(min(48 << 20, max(32 << 20, 2 * vmem_est)))

    # Note on grid order: with BlockSpec revisiting, total HBM reads are
    # |X|*(Np/tn) + |W|*(Bp/tm) regardless of which of i/j is outermost; the
    # lever for |X| >> |W| (large-B training) is growing tm, which plan_tiles
    # already prefers via the larger default tm.
    out_padded = pl.pallas_call(
        _linear_relu_kernel,
        out_shape=jax.ShapeDtypeStruct((bp, np_pad), out_dtype),
        grid_spec=pltpu.PrefetchScalarGridSpec(
            num_scalar_prefetch=0,
            grid=grid,
            in_specs=[
                pl.BlockSpec((tm, tk), lambda i, j, k: (i, k)),  # x tile
                w_spec,                                          # W tile (K, N)
            ],
            out_specs=pl.BlockSpec((tm, tn), lambda i, j, k: (i, j)),
            scratch_shapes=[pltpu.VMEM((tm, tn), jnp.float32)],
        ),
        compiler_params=pltpu.CompilerParams(
            dimension_semantics=("parallel", "parallel", "arbitrary"),
            vmem_limit_bytes=vmem_limit,
        ),
        cost_estimate=pl.CostEstimate(
            flops=2 * bp * np_pad * kp,
            transcendentals=0,
            bytes_accessed=(bp * kp * 2 * (np_pad // tn)
                            + kp * np_pad * 2 * (bp // tm)
                            + bp * np_pad * out_itemsize),
        ),
    )(xp, w_prepared)

    if (bp, np_pad) != (b, d_out):
        out_padded = out_padded[:b, :d_out]
    return out_padded


def linear_block(x, weight, *, tm=512, tn=512, tk=1024, out_dtype=None):
    """Convenience path (plans + prepares W on every call).

    For a real model, call plan_tiles(...) and prepare_weight(...) ONCE and
    reuse them via linear_block_prepared — that keeps the full-weight
    cast/pad/transpose out of the per-forward hot path.
    """
    b, d_in = x.shape
    d_out, d_in_w = weight.shape
    assert d_in == d_in_w, "weight must be (D_out, D_in)"
    plan = plan_tiles(b, d_in, d_out, tm=tm, tn=tn, tk=tk)
    w_prepared = prepare_weight(weight, plan)
    return linear_block_prepared(x, w_prepared, plan=plan, out_dtype=out_dtype)


# TODO(synk): fp8 weight storage with per-output-channel scales (v7x MXU) for
# the weight-bound inference regime; v5e/v6e would need the int8 path instead.


if __name__ == "__main__":
    key = jax.random.PRNGKey(0)
    kx, kw = jax.random.split(key)

    # Small shapes consistent with a LinearBlock forward.
    B, D_in, D_out = 8, 32, 64

    x = jax.random.normal(kx, (B, D_in), dtype=jnp.float32)
    # Deterministic synthetic weight (mimics kaiming-uniform scale of nn.Linear).
    bound = 1.0 / (D_in ** 0.5)
    weight = jax.random.uniform(
        kw, (D_out, D_in), dtype=jnp.float32, minval=-bound, maxval=bound
    )

    # Hot-path usage: plan + prepare the weight ONCE, reuse across forwards.
    plan = plan_tiles(B, D_in, D_out)
    w_prep = prepare_weight(weight, plan)
    w_prep = jax.block_until_ready(w_prep)   # one-time cost, outside the hot path

    out = linear_block_prepared(x, w_prep, plan=plan)
    jax.block_until_ready(out)

    # Reference in plain JAX (same math as torch: relu(x @ W.T)).
    ref = jnp.maximum(x @ weight.T, 0.0)
    assert out.shape == (B, D_out)
    # bf16 MXU operands with f32 accumulation → relaxed tolerance vs f32 ref.
    assert jnp.allclose(out, ref, atol=2e-2, rtol=2e-2)

    print("KERNEL_OK")
</pallas_src>

<mosaic_0001>
module attributes {stable_mosaic.version = 11 : i64} {
  func.func @_linear_relu_kernel(%arg0: i32, %arg1: i32, %arg2: i32, %arg3: memref<16x128xbf16, #tpu.memory_space<vmem>>, %arg4: memref<128x128xbf16, #tpu.memory_space<vmem>>, %arg5: memref<16x128xf32, #tpu.memory_space<vmem>>, %arg6: memref<16x128xf32, #tpu.memory_space<vmem>>) attributes {dimension_semantics = [#tpu.dimension_semantics<parallel>, #tpu.dimension_semantics<parallel>, #tpu.dimension_semantics<arbitrary>], iteration_bounds = array<i64: 1, 1, 1>, scalar_prefetch = 0 : i64, scratch_operands = 1 : i64, tpu.core_type = #tpu.core_type<tc>, window_params = [{transform_indices = @transform_0, window_bounds = array<i64: 16, 128>}, {transform_indices = @transform_1, window_bounds = array<i64: 128, 128>}, {transform_indices = @transform_2, window_bounds = array<i64: 16, 128>}]} {
    %c0_i32 = arith.constant 0 : i32
    %0 = arith.cmpi eq, %arg2, %c0_i32 : i32
    %1 = arith.extui %0 : i1 to i32
    %c0_i32_0 = arith.constant 0 : i32
    %2 = arith.cmpi ne, %1, %c0_i32_0 : i32
    scf.if %2 {
      %cst_10 = arith.constant 0.000000e+00 : f32
      %12 = vector.broadcast %cst_10 : f32 to vector<16x128xf32>
      %c0_11 = arith.constant 0 : index
      %c0_12 = arith.constant 0 : index
      %13 = vector.load %arg6[%c0_11, %c0_12] : memref<16x128xf32, #tpu.memory_space<vmem>>, vector<16x128xf32>
      tpu.vector_store %arg6[%c0_11, %c0_12], %12 {strides = array<i32>} : memref<16x128xf32, #tpu.memory_space<vmem>>, vector<16x128xf32>,
    } else {
    }
    %c0 = arith.constant 0 : index
    %c0_1 = arith.constant 0 : index
    %3 = vector.load %arg6[%c0, %c0_1] : memref<16x128xf32, #tpu.memory_space<vmem>>, vector<16x128xf32>
    %c0_2 = arith.constant 0 : index
    %c0_3 = arith.constant 0 : index
    %4 = vector.load %arg3[%c0_2, %c0_3] : memref<16x128xbf16, #tpu.memory_space<vmem>>, vector<16x128xbf16>
    %c0_4 = arith.constant 0 : index
    %c0_5 = arith.constant 0 : index
    %5 = vector.load %arg4[%c0_4, %c0_5] : memref<128x128xbf16, #tpu.memory_space<vmem>>, vector<128x128xbf16>
    %cst = arith.constant dense<0.000000e+00> : vector<16x128xf32>
    %6 = tpu.matmul %4, %5, %cst {dimension_numbers = #tpu.dot_dimension_numbers<[1], [0], [0], [1], [0, 0, 1, 1], [], []>} : vector<16x128xbf16>, vector<128x128xbf16>, vector<16x128xf32> -> vector<16x128xf32>
    %7 = arith.addf %3, %6 : vector<16x128xf32>
    %c0_6 = arith.constant 0 : index
    %c0_7 = arith.constant 0 : index
    %8 = vector.load %arg6[%c0_6, %c0_7] : memref<16x128xf32, #tpu.memory_space<vmem>>, vector<16x128xf32>
    tpu.vector_store %arg6[%c0_6, %c0_7], %7 {strides = array<i32>} : memref<16x128xf32, #tpu.memory_space<vmem>>, vector<16x128xf32>,
    %c0_i32_8 = arith.constant 0 : i32
    %9 = arith.cmpi eq, %arg2, %c0_i32_8 : i32
    %10 = arith.extui %9 : i1 to i32
    %c0_i32_9 = arith.constant 0 : i32
    %11 = arith.cmpi ne, %10, %c0_i32_9 : i32
    scf.if %11 {
      %c0_10 = arith.constant 0 : index
      %c0_11 = arith.constant 0 : index
      %12 = vector.load %arg6[%c0_10, %c0_11] : memref<16x128xf32, #tpu.memory_space<vmem>>, vector<16x128xf32>
      %cst_12 = arith.constant 0.000000e+00 : f32
      %13 = vector.broadcast %cst_12 : f32 to vector<16x128xf32>
      %14 = arith.maximumf %12, %13 : vector<16x128xf32>
      %c0_13 = arith.constant 0 : index
      %c0_14 = arith.constant 0 : index
      %15 = vector.load %arg5[%c0_13, %c0_14] : memref<16x128xf32, #tpu.memory_space<vmem>>, vector<16x128xf32>
      tpu.vector_store %arg5[%c0_13, %c0_14], %14 {strides = array<i32>} : memref<16x128xf32, #tpu.memory_space<vmem>>, vector<16x128xf32>,
    } else {
    }
    return
  }
  func.func @transform_0(%arg0: i32, %arg1: i32, %arg2: i32) -> (i32, i32) {
    %c0_i32 = arith.constant 0 : i32
    return %arg0, %arg2 : i32, i32
  }
  func.func @transform_1(%arg0: i32, %arg1: i32, %arg2: i32) -> (i32, i32) {
    %c0_i32 = arith.constant 0 : i32
    return %arg2, %arg1 : i32, i32
  }
  func.func @transform_2(%arg0: i32, %arg1: i32, %arg2: i32) -> (i32, i32) {
    %c0_i32 = arith.constant 0 : i32
    return %arg0, %arg1 : i32, i32
  }
}

</mosaic_0001>

<bundles_post_ra>
// kernel: linear_block_prepared.1
= control target key start
LH: loop header
LB: loop body
LE: loop exit
PB: predicated region body
PF: predicated region fallthrough
CT: control target
= control target key end

     0   :  { %7 = vsyncpa [#allocation4], 0  ;;  %s241_s9 = smov [#allocation3]   ;;  %s282_s0 = inlined_call_operand.vmem [shape: bf16[16,128], index: 0, kind: input, shape index: {}]   ;;  %s283_s1 = inlined_call_operand.hbm [shape: bf16[128,128], index: 1, kind: input, shape index: {}]   ;;  %s284_s2 = inlined_call_operand.vmem [shape: f32[16,128], index: 2, kind: output, shape index: {}]  }
   0x1   :  { %s15_s10 = sshll.u32 %s241_s9, 4  ;;  %s217_s13 = scalar_lea.hbm %s283_s1, 1024  ;;  %s16_s10 = int_to_ptr.vmem [resolvable:$true] %s15_s10 }
   0x2   :  { %p218_p0 = scmp.ne.s32.totalorder %s283_s1, %s217_s13  ;;  %p221_p1 = scmp.lt.u32.totalorder %s217_s13, %s283_s1 }
   0x4   :  { %p223_p2 = pnand %p221_p1, %p218_p0 }
   0x6   :  { %226 = shalt.err (!%p223_p2)
}
   0x7   :  { %s227_s18 = scalar_lea.vmem %s16_s10, 1024  ;;  %p232_p4 = scmp.lt.s32.totalorder %s16_s10, %s16_s10 }
   0x8   :  { %p228_p3 = scmp.ne.s32.totalorder %s16_s10, %s227_s18  ;;  %p233_p5 = scmp.lt.s32.totalorder %s227_s18, %s227_s18 }
   0xa   :  { %p234_p6 = por %p233_p5, %p232_p4 }
   0xc   :  { %p235_p7 = pnand %p234_p6, %p228_p3 }
   0xe   :  { %238 = shalt.err (!%p235_p7)
}
   0xf   :  { %s242_s19 = smov 64   ;;  %s243_s20 = smov 4  }
  0x10   :  { %21 = dma.hbm_to_vmem [thread:$0]  %s283_s1, 1024, %s16_s10, [#allocation4], %s242_s19, %s242_s19, %s243_s20  }
  0x11   :  { %239 = dma.done.wait [#allocation4], 1024  }
  0x12   :  { %240 = vsyncadd [#allocation4], 4294966272  ;;  %v244_v0 = vmov 0.0   ;;  %vm245_vm0 = vmmov 0   ;;  %v208_v1 = vld [vmem:[#allocation3] sm:$0xff]   ;;  %v209_v2 = vld [vmem:[#allocation3 + $0x8] sm:$0xff]  }
  0x13   :  { %183 = vmatprep.subr.bf16.mxu0 %v244_v0  ;;  %199 = vmatprep.mubr.msk.bf16.mxu0 %vm245_vm0, %v244_v0  ;;  %v210_v3 = vld [vmem:[#allocation3 + $0x10] sm:$0xff]   ;;  %v211_v4 = vld [vmem:[#allocation3 + $0x18] sm:$0xff]   ;;  %v212_v5 = vld [vmem:[#allocation3 + $0x20] sm:$0xff]  }
  0x14   :  { %184 = vmatpush3.bf16.msra.mxu0 %v208_v1  ;;  %v213_v6 = vld [vmem:[#allocation3 + $0x28] sm:$0xff]   ;;  %v214_v7 = vld [vmem:[#allocation3 + $0x30] sm:$0xff]   ;;  %v215_v8 = vld [vmem:[#allocation3 + $0x38] sm:$0xff]  }
  0x15   :  { %185 = vmatprep.subr.bf16.mxu0 %v244_v0  ;;  %v216_v9 = vld [vmem:[%s282_s0] sm:$0xff]  }
  0x18   :  { %186 = vmatpush3.bf16.msra.mxu0 %v209_v2 }
  0x19   :  { %187 = vmatprep.subr.bf16.mxu0 %v244_v0 }
  0x1c   :  { %188 = vmatpush3.bf16.msra.mxu0 %v210_v3 }
  0x1d   :  { %189 = vmatprep.subr.bf16.mxu0 %v244_v0 }
  0x20   :  { %190 = vmatpush3.bf16.msra.mxu0 %v211_v4 }
  0x21   :  { %191 = vmatprep.subr.bf16.mxu0 %v244_v0 }
  0x24   :  { %192 = vmatpush3.bf16.msra.mxu0 %v212_v5 }
  0x25   :  { %193 = vmatprep.subr.bf16.mxu0 %v244_v0 }
  0x28   :  { %194 = vmatpush3.bf16.msra.mxu0 %v213_v6 }
  0x29   :  { %195 = vmatprep.subr.bf16.mxu0 %v244_v0 }
  0x2c   :  { %196 = vmatpush3.bf16.msra.mxu0 %v214_v7 }
  0x2d   :  { %197 = vmatprep.subr.bf16.mxu0 %v244_v0 }
  0x30   :  { %198 = vmatpush3.bf16.msra.mxu0 %v215_v8 }
  0x33   :  { %200 = vmatmul.mubr.bf16.vlgmr.msra.gmra.mrb[0].mxu0 %v216_v9 }
 0x106   :  { %v140_v10 = vpop.f32.mrb[0].mxu0 }
 0x107   :  { %v156_v11 = vmax.f32 %v140_v10, 0.0  ;;  %v201_v12 = vpop.f32.mrb[1].mxu0 }
 0x108   :  { %v143_v13 = vpop.f32.mrb[2].mxu0 }
 0x109   :  { %158 = vst [vmem:[%s284_s2] sm:$0xff] %v156_v11  ;;  %v157_v14 = vmax.f32 %v143_v13, 0.0  ;;  %v202_v15 = vpop.f32.mrb[3].mxu0 }
 0x10b   :  { %159 = vst [vmem:[%s284_s2 + $0x8] sm:$0xff] %v157_v14 }
 0x10c   :  { %164 = vsyncpa [#allocation4], 1 }

</bundles_post_ra>
